<compile_context>
chip_gen: v7x
topology: tpu7x:2x2x1
jax: 0.10.0
libtpu: 0.0.40
codegen_flags: <defaults>
</compile_context>

<pallas_src>
import functools

import jax
import jax.numpy as jnp
from jax import lax
from jax.experimental import pallas as pl
from jax.experimental.pallas import tpu as pltpu


_VMEM_LIMIT_BYTES = 32 * 1024 * 1024   # explicit scoped-VMEM budget (fits v7x)


# ----------------------------- kernels ---------------------------------------
def _matmul_bn_act_kernel(x_ref, w_ref, scale_ref, bias_ref, o_ref, *, relu):
    """(TM, K) x (K, N) matmul + folded-BN scale/bias (+ReLU). bf16 in, f32 acc."""
    acc = jnp.dot(x_ref[...], w_ref[...], preferred_element_type=jnp.float32)
    y = acc * scale_ref[...] + bias_ref[...]            # epilogue stays in f32
    if relu:
        y = jnp.maximum(y, 0.0)
    o_ref[...] = y.astype(o_ref.dtype)


def _matmul_bias_relu_kernel(x_ref, w_ref, bias_ref, o_ref):
    """Fused conv3+projection-shortcut: one matmul over concatenated K + bias + ReLU.
    (BN scales are pre-folded into the weights; biases pre-summed.)"""
    acc = jnp.dot(x_ref[...], w_ref[...], preferred_element_type=jnp.float32)
    o_ref[...] = jnp.maximum(acc + bias_ref[...], 0.0).astype(o_ref.dtype)


def _matmul_bias_residual_relu_kernel(h_ref, w_ref, bias_ref, x_ref, o_ref):
    """conv3 (+folded bn3) + identity shortcut (plain add, no eye-matmul) + ReLU."""
    acc = jnp.dot(h_ref[...], w_ref[...], preferred_element_type=jnp.float32)
    y = acc + bias_ref[...] + x_ref[...].astype(jnp.float32)
    o_ref[...] = jnp.maximum(y, 0.0).astype(o_ref.dtype)


# -------------------------- tiled pallas_call helper --------------------------
def _row_tiled_call(kernel, args, out_cols, out_dtype, m_tile):
    """Run `kernel` over row-tiles of its 2-D operands.

    args: list of (array, row_tiled) in kernel-argument order.  Row-tiled arrays
    share the same leading dim M and are blocked (m_tile, C) over a 1-D grid;
    the others (weights / folded-BN vectors) are passed as whole VMEM-resident
    blocks.  The M grid axis is marked "parallel" (megacore sharding on v7x).
    """
    assert m_tile % 8 == 0, "m_tile must be a multiple of 8 (sublane)"
    M = next(a.shape[0] for a, tiled in args if tiled)
    tm = min(m_tile, M)
    num_tiles = (M + tm - 1) // tm
    Mp = num_tiles * tm

    operands, in_specs = [], []
    for a, tiled in args:
        if tiled:
            assert a.shape[0] == M
            if Mp != M:
                a = jnp.pad(a, ((0, Mp - M), (0, 0)))
            in_specs.append(pl.BlockSpec((tm, a.shape[1]), lambda i: (i, 0)))
        else:
            in_specs.append(pl.BlockSpec(a.shape, lambda i: (0, 0)))
        operands.append(a)

    out = pl.pallas_call(
        kernel,
        out_shape=jax.ShapeDtypeStruct((Mp, out_cols), out_dtype),
        grid=(num_tiles,),
        in_specs=in_specs,
        out_specs=pl.BlockSpec((tm, out_cols), lambda i: (i, 0)),
        compiler_params=pltpu.CompilerParams(
            dimension_semantics=("parallel",),
            vmem_limit_bytes=_VMEM_LIMIT_BYTES,
        ),
    )(*operands)
    return out if Mp == M else out[:M]


# ------------------------------- glue / wrapper -------------------------------
def block_forward(x_nchw, p, *, stride, cardinality, bottleneck_width, m_tile=512):
    N, Cin, H, W = x_nchw.shape
    GW = cardinality * bottleneck_width
    Cexp = 2 * GW

    x = jnp.transpose(x_nchw, (0, 2, 3, 1))               # NHWC (channels -> lanes)
    x2d = x.reshape(N * H * W, Cin)

    # ---- conv1 (1x1) + bn1 + relu : tiled matmul, bf16 MXU inputs, bf16 h1 ----
    h1 = _row_tiled_call(
        functools.partial(_matmul_bn_act_kernel, relu=True),
        [(x2d.astype(jnp.bfloat16), True),
         (p["w1"].astype(jnp.bfloat16), False),
         (p["scale1"], False), (p["bias1"], False)],
        out_cols=GW, out_dtype=jnp.bfloat16, m_tile=m_tile)
    h1 = h1.reshape(N, H, W, GW)

    # ---- conv2: grouped 3x3, stride, pad=1 -------------------------------------
    # 9 taps folded into the contraction: single (TM, 9*GW) x (9*GW, GW) matmul
    # per tile (block-diagonal dense weight encodes the group structure).
    # NOTE: for production ResNeXt (cardinality=32, bw=4) GW=128, so all lane
    # dims are already dense multiples of 128.
    Ho = (H + 2 - 3) // stride + 1
    Wo = (W + 2 - 3) // stride + 1
    h1p = jnp.pad(h1, ((0, 0), (1, 1), (1, 1), (0, 0)))
    taps = []
    for ky in range(3):
        for kx in range(3):
            t = h1p[:, ky:ky + stride * (Ho - 1) + 1:stride,
                       kx:kx + stride * (Wo - 1) + 1:stride, :]
            taps.append(t.reshape(N * Ho * Wo, GW))
    patches = jnp.concatenate(taps, axis=1)                # (M2, 9*GW) bf16

    h2 = _row_tiled_call(
        functools.partial(_matmul_bn_act_kernel, relu=True),
        [(patches, True),
         (p["w2_flat"].astype(jnp.bfloat16), False),
         (p["scale2"], False), (p["bias2"], False)],
        out_cols=GW, out_dtype=jnp.bfloat16, m_tile=m_tile)

    # ---- conv3 + bn3 + shortcut + add + relu -----------------------------------
    xs = x[:, ::stride, ::stride, :].reshape(N * Ho * Wo, Cin)
    w3s = (p["w3"] * p["scale3"]).astype(jnp.bfloat16)     # fold bn3 scale into w3

    if stride != 1 or Cin != Cexp:
        # Projection shortcut: fuse conv3 and the shortcut conv into ONE matmul
        # over the concatenated K axis [h2 | xs]; both BN scales folded into the
        # stacked weight, biases pre-summed.
        wss = (p["ws"] * p["scales"]).astype(jnp.bfloat16)
        w_comb = jnp.concatenate([w3s, wss], axis=0)        # (GW + Cin, Cexp)
        b_comb = p["bias3"] + p["biass"]                    # (1, Cexp)
        hx = jnp.concatenate([h2, xs.astype(jnp.bfloat16)], axis=1)
        y2d = _row_tiled_call(
            _matmul_bias_relu_kernel,
            [(hx, True), (w_comb, False), (b_comb, False)],
            out_cols=Cexp, out_dtype=jnp.float32, m_tile=m_tile)
    else:
        # Identity shortcut: plain residual add in f32 (no eye-matmul, exact).
        y2d = _row_tiled_call(
            _matmul_bias_residual_relu_kernel,
            [(h2, True), (w3s, False), (p["bias3"], False), (xs, True)],
            out_cols=Cexp, out_dtype=jnp.float32, m_tile=m_tile)

    y = y2d.reshape(N, Ho, Wo, Cexp)
    return jnp.transpose(y, (0, 3, 1, 2))                   # back to NCHW


# ------------------------------ parameter init --------------------------------
def init_params(key, in_planes, cardinality, bottleneck_width, eps=1e-5):
    GW = cardinality * bottleneck_width
    Cexp = 2 * GW
    bw = bottleneck_width
    ks = jax.random.split(key, 8)

    def bn_affine(k, C):
        k1, k2, k3, k4 = jax.random.split(k, 4)
        gamma = 1.0 + 0.1 * jax.random.normal(k1, (C,), jnp.float32)
        beta = 0.1 * jax.random.normal(k2, (C,), jnp.float32)
        mean = 0.1 * jax.random.normal(k3, (C,), jnp.float32)
        var = 1.0 + 0.1 * jnp.abs(jax.random.normal(k4, (C,), jnp.float32))
        scale = gamma / jnp.sqrt(var + eps)
        bias = beta - mean * scale
        return scale.reshape(1, C), bias.reshape(1, C)

    w1 = 0.1 * jax.random.normal(ks[0], (in_planes, GW), jnp.float32)
    scale1, bias1 = bn_affine(ks[1], GW)

    # grouped 3x3 weight: [kh, kw, group, cin_in_group, cout_in_group]
    w2_grouped = 0.1 * jax.random.normal(ks[2], (3, 3, cardinality, bw, bw), jnp.float32)
    w2g = w2_grouped.reshape(9, cardinality, bw, bw)
    w2_dense = jnp.zeros((9, GW, GW), jnp.float32)
    for g in range(cardinality):
        sl = slice(g * bw, (g + 1) * bw)
        w2_dense = w2_dense.at[:, sl, sl].set(w2g[:, g])
    w2_flat = w2_dense.reshape(9 * GW, GW)                  # taps folded into K
    scale2, bias2 = bn_affine(ks[3], GW)

    w3 = 0.1 * jax.random.normal(ks[4], (GW, Cexp), jnp.float32)
    scale3, bias3 = bn_affine(ks[5], Cexp)

    ws = 0.1 * jax.random.normal(ks[6], (in_planes, Cexp), jnp.float32)
    scales, biass = bn_affine(ks[7], Cexp)

    return dict(w1=w1, scale1=scale1, bias1=bias1,
                w2_grouped=w2_grouped, w2_flat=w2_flat, scale2=scale2, bias2=bias2,
                w3=w3, scale3=scale3, bias3=bias3,
                ws=ws, scales=scales, biass=biass)


# ------------------------------ pure-JAX reference ----------------------------
def reference_forward(x_nchw, p, stride, cardinality, bottleneck_width):
    bw = bottleneck_width
    GW = cardinality * bw
    x = jnp.transpose(x_nchw, (0, 2, 3, 1))
    dn = ("NHWC", "HWIO", "NHWC")

    def bn(y, scale, bias):
        return y * scale.reshape(1, 1, 1, -1) + bias.reshape(1, 1, 1, -1)

    h = lax.conv_general_dilated(x, p["w1"].reshape(1, 1, *p["w1"].shape),
                                 (1, 1), "VALID", dimension_numbers=dn)
    h = jax.nn.relu(bn(h, p["scale1"], p["bias1"]))

    w2_hwio = jnp.transpose(p["w2_grouped"], (0, 1, 3, 2, 4)).reshape(3, 3, bw, GW)
    h = lax.conv_general_dilated(h, w2_hwio, (stride, stride), ((1, 1), (1, 1)),
                                 dimension_numbers=dn, feature_group_count=cardinality)
    h = jax.nn.relu(bn(h, p["scale2"], p["bias2"]))

    h = lax.conv_general_dilated(h, p["w3"].reshape(1, 1, *p["w3"].shape),
                                 (1, 1), "VALID", dimension_numbers=dn)
    h = bn(h, p["scale3"], p["bias3"])

    if stride != 1 or x.shape[-1] != 2 * GW:
        sc = lax.conv_general_dilated(x, p["ws"].reshape(1, 1, *p["ws"].shape),
                                      (stride, stride), "VALID", dimension_numbers=dn)
        sc = bn(sc, p["scales"], p["biass"])
    else:
        sc = x
    out = jax.nn.relu(h + sc)
    return jnp.transpose(out, (0, 3, 1, 2))


# ------------------------------------ main -------------------------------------
if __name__ == "__main__":
    cardinality, bottleneck_width = 4, 4          # GW = 16, expansion*GW = 32
    GW = cardinality * bottleneck_width
    Cexp = 2 * GW

    key = jax.random.PRNGKey(0)
    kx, kp, kx2, kp2 = jax.random.split(key, 4)

    fwd = jax.jit(block_forward,
                  static_argnames=("stride", "cardinality", "bottleneck_width", "m_tile"))

    # 1) Projection-shortcut configs (in_planes != expansion*GW), strides 1 and 2.
    N, Cin, H, W = 2, 8, 16, 16
    x = jax.random.normal(kx, (N, Cin, H, W), jnp.float32)
    params = init_params(kp, Cin, cardinality, bottleneck_width)
    for stride in (1, 2):
        out = fwd(x, params, stride=stride, cardinality=cardinality,
                  bottleneck_width=bottleneck_width, m_tile=128)
        out = jax.block_until_ready(out)
        ref = reference_forward(x, params, stride, cardinality, bottleneck_width)
        assert out.shape == (N, Cexp, H // stride, W // stride)
        assert jnp.allclose(out, ref, atol=5e-2, rtol=5e-2), f"mismatch stride={stride}"

    # 2) Identity-shortcut config (in_planes == expansion*GW, stride 1).
    x_id = jax.random.normal(kx2, (N, Cexp, H, W), jnp.float32)
    params_id = init_params(kp2, Cexp, cardinality, bottleneck_width)
    out = fwd(x_id, params_id, stride=1, cardinality=cardinality,
              bottleneck_width=bottleneck_width, m_tile=128)
    out = jax.block_until_ready(out)
    ref = reference_forward(x_id, params_id, 1, cardinality, bottleneck_width)
    assert out.shape == (N, Cexp, H, W)
    assert jnp.allclose(out, ref, atol=5e-2, rtol=5e-2), "mismatch identity shortcut"

    print("KERNEL_OK")
</pallas_src>

<mosaic_0001>
module attributes {stable_mosaic.version = 11 : i64} {
  func.func @_matmul_bn_act_kernel(%arg0: i32, %arg1: memref<128x8xbf16, #tpu.memory_space<vmem>>, %arg2: memref<8x16xbf16, #tpu.memory_space<vmem>>, %arg3: memref<1x16xf32, #tpu.memory_space<vmem>>, %arg4: memref<1x16xf32, #tpu.memory_space<vmem>>, %arg5: memref<128x16xbf16, #tpu.memory_space<vmem>>) attributes {dimension_semantics = [#tpu.dimension_semantics<parallel>], iteration_bounds = array<i64: 4>, scalar_prefetch = 0 : i64, scratch_operands = 0 : i64, tpu.core_type = #tpu.core_type<tc>, window_params = [{transform_indices = @transform_0, window_bounds = array<i64: 128, 8>}, {pipeline_mode = #tpu.pipeline_mode<synchronous>, transform_indices = @transform_1, window_bounds = array<i64: 8, 16>}, {pipeline_mode = #tpu.pipeline_mode<synchronous>, transform_indices = @transform_2, window_bounds = array<i64: 1, 16>}, {pipeline_mode = #tpu.pipeline_mode<synchronous>, transform_indices = @transform_3, window_bounds = array<i64: 1, 16>}, {transform_indices = @transform_4, window_bounds = array<i64: 128, 16>}]} {
    %c0 = arith.constant 0 : index
    %c0_0 = arith.constant 0 : index
    %0 = vector.load %arg1[%c0, %c0_0] : memref<128x8xbf16, #tpu.memory_space<vmem>>, vector<128x8xbf16>
    %c0_1 = arith.constant 0 : index
    %c0_2 = arith.constant 0 : index
    %1 = vector.load %arg2[%c0_1, %c0_2] : memref<8x16xbf16, #tpu.memory_space<vmem>>, vector<8x16xbf16>
    %cst = arith.constant dense<0.000000e+00> : vector<128x16xf32>
    %2 = tpu.matmul %0, %1, %cst {dimension_numbers = #tpu.dot_dimension_numbers<[1], [0], [0], [1], [0, 0, 1, 1], [], []>} : vector<128x8xbf16>, vector<8x16xbf16>, vector<128x16xf32> -> vector<128x16xf32>
    %c0_3 = arith.constant 0 : index
    %c0_4 = arith.constant 0 : index
    %3 = vector.load %arg3[%c0_3, %c0_4] : memref<1x16xf32, #tpu.memory_space<vmem>>, vector<1x16xf32>
    %4 = vector.broadcast %3 : vector<1x16xf32> to vector<128x16xf32>
    %5 = arith.mulf %2, %4 : vector<128x16xf32>
    %c0_5 = arith.constant 0 : index
    %c0_6 = arith.constant 0 : index
    %6 = vector.load %arg4[%c0_5, %c0_6] : memref<1x16xf32, #tpu.memory_space<vmem>>, vector<1x16xf32>
    %7 = vector.broadcast %6 : vector<1x16xf32> to vector<128x16xf32>
    %8 = arith.addf %5, %7 : vector<128x16xf32>
    %cst_7 = arith.constant 0.000000e+00 : f32
    %9 = vector.broadcast %cst_7 : f32 to vector<128x16xf32>
    %10 = arith.maximumf %8, %9 : vector<128x16xf32>
    %11 = arith.truncf %10 : vector<128x16xf32> to vector<128x16xbf16>
    %c0_8 = arith.constant 0 : index
    %c0_9 = arith.constant 0 : index
    %12 = vector.load %arg5[%c0_8, %c0_9] : memref<128x16xbf16, #tpu.memory_space<vmem>>, vector<128x16xbf16>
    tpu.vector_store %arg5[%c0_8, %c0_9], %11 {strides = array<i32>} : memref<128x16xbf16, #tpu.memory_space<vmem>>, vector<128x16xbf16>,
    return
  }
  func.func @transform_0(%arg0: i32) -> (i32, i32) {
    %c0_i32 = arith.constant 0 : i32
    %c0_i32_0 = arith.constant 0 : i32
    return %arg0, %c0_i32 : i32, i32
  }
  func.func @transform_1(%arg0: i32) -> (i32, i32) {
    %c0_i32 = arith.constant 0 : i32
    %c0_i32_0 = arith.constant 0 : i32
    %c0_i32_1 = arith.constant 0 : i32
    return %c0_i32, %c0_i32_0 : i32, i32
  }
  func.func @transform_2(%arg0: i32) -> (i32, i32) {
    %c0_i32 = arith.constant 0 : i32
    %c0_i32_0 = arith.constant 0 : i32
    %c0_i32_1 = arith.constant 0 : i32
    return %c0_i32, %c0_i32_0 : i32, i32
  }
  func.func @transform_3(%arg0: i32) -> (i32, i32) {
    %c0_i32 = arith.constant 0 : i32
    %c0_i32_0 = arith.constant 0 : i32
    %c0_i32_1 = arith.constant 0 : i32
    return %c0_i32, %c0_i32_0 : i32, i32
  }
  func.func @transform_4(%arg0: i32) -> (i32, i32) {
    %c0_i32 = arith.constant 0 : i32
    %c0_i32_0 = arith.constant 0 : i32
    return %arg0, %c0_i32 : i32, i32
  }
}

module attributes {stable_mosaic.version = 11 : i64} {
  func.func @_matmul_bn_act_kernel(%arg0: i32, %arg1: memref<128x144xbf16, #tpu.memory_space<vmem>>, %arg2: memref<144x16xbf16, #tpu.memory_space<vmem>>, %arg3: memref<1x16xf32, #tpu.memory_space<vmem>>, %arg4: memref<1x16xf32, #tpu.memory_space<vmem>>, %arg5: memref<128x16xbf16, #tpu.memory_space<vmem>>) attributes {dimension_semantics = [#tpu.dimension_semantics<parallel>], iteration_bounds = array<i64: 4>, scalar_prefetch = 0 : i64, scratch_operands = 0 : i64, tpu.core_type = #tpu.core_type<tc>, window_params = [{transform_indices = @transform_0, window_bounds = array<i64: 128, 144>}, {pipeline_mode = #tpu.pipeline_mode<synchronous>, transform_indices = @transform_1, window_bounds = array<i64: 144, 16>}, {pipeline_mode = #tpu.pipeline_mode<synchronous>, transform_indices = @transform_2, window_bounds = array<i64: 1, 16>}, {pipeline_mode = #tpu.pipeline_mode<synchronous>, transform_indices = @transform_3, window_bounds = array<i64: 1, 16>}, {transform_indices = @transform_4, window_bounds = array<i64: 128, 16>}]} {
    %c0 = arith.constant 0 : index
    %c0_0 = arith.constant 0 : index
    %0 = vector.load %arg1[%c0, %c0_0] : memref<128x144xbf16, #tpu.memory_space<vmem>>, vector<128x144xbf16>
    %c0_1 = arith.constant 0 : index
    %c0_2 = arith.constant 0 : index
    %1 = vector.load %arg2[%c0_1, %c0_2] : memref<144x16xbf16, #tpu.memory_space<vmem>>, vector<144x16xbf16>
    %cst = arith.constant dense<0.000000e+00> : vector<128x16xf32>
    %2 = tpu.matmul %0, %1, %cst {dimension_numbers = #tpu.dot_dimension_numbers<[1], [0], [0], [1], [0, 0, 1, 1], [], []>} : vector<128x144xbf16>, vector<144x16xbf16>, vector<128x16xf32> -> vector<128x16xf32>
    %c0_3 = arith.constant 0 : index
    %c0_4 = arith.constant 0 : index
    %3 = vector.load %arg3[%c0_3, %c0_4] : memref<1x16xf32, #tpu.memory_space<vmem>>, vector<1x16xf32>
    %4 = vector.broadcast %3 : vector<1x16xf32> to vector<128x16xf32>
    %5 = arith.mulf %2, %4 : vector<128x16xf32>
    %c0_5 = arith.constant 0 : index
    %c0_6 = arith.constant 0 : index
    %6 = vector.load %arg4[%c0_5, %c0_6] : memref<1x16xf32, #tpu.memory_space<vmem>>, vector<1x16xf32>
    %7 = vector.broadcast %6 : vector<1x16xf32> to vector<128x16xf32>
    %8 = arith.addf %5, %7 : vector<128x16xf32>
    %cst_7 = arith.constant 0.000000e+00 : f32
    %9 = vector.broadcast %cst_7 : f32 to vector<128x16xf32>
    %10 = arith.maximumf %8, %9 : vector<128x16xf32>
    %11 = arith.truncf %10 : vector<128x16xf32> to vector<128x16xbf16>
    %c0_8 = arith.constant 0 : index
    %c0_9 = arith.constant 0 : index
    %12 = vector.load %arg5[%c0_8, %c0_9] : memref<128x16xbf16, #tpu.memory_space<vmem>>, vector<128x16xbf16>
    tpu.vector_store %arg5[%c0_8, %c0_9], %11 {strides = array<i32>} : memref<128x16xbf16, #tpu.memory_space<vmem>>, vector<128x16xbf16>,
    return
  }
  func.func @transform_0(%arg0: i32) -> (i32, i32) {
    %c0_i32 = arith.constant 0 : i32
    %c0_i32_0 = arith.constant 0 : i32
    return %arg0, %c0_i32 : i32, i32
  }
  func.func @transform_1(%arg0: i32) -> (i32, i32) {
    %c0_i32 = arith.constant 0 : i32
    %c0_i32_0 = arith.constant 0 : i32
    %c0_i32_1 = arith.constant 0 : i32
    return %c0_i32, %c0_i32_0 : i32, i32
  }
  func.func @transform_2(%arg0: i32) -> (i32, i32) {
    %c0_i32 = arith.constant 0 : i32
    %c0_i32_0 = arith.constant 0 : i32
    %c0_i32_1 = arith.constant 0 : i32
    return %c0_i32, %c0_i32_0 : i32, i32
  }
  func.func @transform_3(%arg0: i32) -> (i32, i32) {
    %c0_i32 = arith.constant 0 : i32
    %c0_i32_0 = arith.constant 0 : i32
    %c0_i32_1 = arith.constant 0 : i32
    return %c0_i32, %c0_i32_0 : i32, i32
  }
  func.func @transform_4(%arg0: i32) -> (i32, i32) {
    %c0_i32 = arith.constant 0 : i32
    %c0_i32_0 = arith.constant 0 : i32
    return %arg0, %c0_i32 : i32, i32
  }
}

module attributes {stable_mosaic.version = 11 : i64} {
  func.func @_matmul_bias_relu_kernel(%arg0: i32, %arg1: memref<128x24xbf16, #tpu.memory_space<vmem>>, %arg2: memref<24x32xbf16, #tpu.memory_space<vmem>>, %arg3: memref<1x32xf32, #tpu.memory_space<vmem>>, %arg4: memref<128x32xf32, #tpu.memory_space<vmem>>) attributes {dimension_semantics = [#tpu.dimension_semantics<parallel>], iteration_bounds = array<i64: 4>, scalar_prefetch = 0 : i64, scratch_operands = 0 : i64, tpu.core_type = #tpu.core_type<tc>, window_params = [{transform_indices = @transform_0, window_bounds = array<i64: 128, 24>}, {pipeline_mode = #tpu.pipeline_mode<synchronous>, transform_indices = @transform_1, window_bounds = array<i64: 24, 32>}, {pipeline_mode = #tpu.pipeline_mode<synchronous>, transform_indices = @transform_2, window_bounds = array<i64: 1, 32>}, {transform_indices = @transform_3, window_bounds = array<i64: 128, 32>}]} {
    %c0 = arith.constant 0 : index
    %c0_0 = arith.constant 0 : index
    %0 = vector.load %arg1[%c0, %c0_0] : memref<128x24xbf16, #tpu.memory_space<vmem>>, vector<128x24xbf16>
    %c0_1 = arith.constant 0 : index
    %c0_2 = arith.constant 0 : index
    %1 = vector.load %arg2[%c0_1, %c0_2] : memref<24x32xbf16, #tpu.memory_space<vmem>>, vector<24x32xbf16>
    %cst = arith.constant dense<0.000000e+00> : vector<128x32xf32>
    %2 = tpu.matmul %0, %1, %cst {dimension_numbers = #tpu.dot_dimension_numbers<[1], [0], [0], [1], [0, 0, 1, 1], [], []>} : vector<128x24xbf16>, vector<24x32xbf16>, vector<128x32xf32> -> vector<128x32xf32>
    %c0_3 = arith.constant 0 : index
    %c0_4 = arith.constant 0 : index
    %3 = vector.load %arg3[%c0_3, %c0_4] : memref<1x32xf32, #tpu.memory_space<vmem>>, vector<1x32xf32>
    %4 = vector.broadcast %3 : vector<1x32xf32> to vector<128x32xf32>
    %5 = arith.addf %2, %4 : vector<128x32xf32>
    %cst_5 = arith.constant 0.000000e+00 : f32
    %6 = vector.broadcast %cst_5 : f32 to vector<128x32xf32>
    %7 = arith.maximumf %5, %6 : vector<128x32xf32>
    %c0_6 = arith.constant 0 : index
    %c0_7 = arith.constant 0 : index
    %8 = vector.load %arg4[%c0_6, %c0_7] : memref<128x32xf32, #tpu.memory_space<vmem>>, vector<128x32xf32>
    tpu.vector_store %arg4[%c0_6, %c0_7], %7 {strides = array<i32>} : memref<128x32xf32, #tpu.memory_space<vmem>>, vector<128x32xf32>,
    return
  }
  func.func @transform_0(%arg0: i32) -> (i32, i32) {
    %c0_i32 = arith.constant 0 : i32
    %c0_i32_0 = arith.constant 0 : i32
    return %arg0, %c0_i32 : i32, i32
  }
  func.func @transform_1(%arg0: i32) -> (i32, i32) {
    %c0_i32 = arith.constant 0 : i32
    %c0_i32_0 = arith.constant 0 : i32
    %c0_i32_1 = arith.constant 0 : i32
    return %c0_i32, %c0_i32_0 : i32, i32
  }
  func.func @transform_2(%arg0: i32) -> (i32, i32) {
    %c0_i32 = arith.constant 0 : i32
    %c0_i32_0 = arith.constant 0 : i32
    %c0_i32_1 = arith.constant 0 : i32
    return %c0_i32, %c0_i32_0 : i32, i32
  }
  func.func @transform_3(%arg0: i32) -> (i32, i32) {
    %c0_i32 = arith.constant 0 : i32
    %c0_i32_0 = arith.constant 0 : i32
    return %arg0, %c0_i32 : i32, i32
  }
}

</mosaic_0001>

<bundles_post_ra>
// kernel: block_forward.3
= control target key start
LH: loop header
LB: loop body
LE: loop exit
PB: predicated region body
PF: predicated region fallthrough
CT: control target
= control target key end

     0   :  { %s725_s15 = smov 0   ;;  %s836_s0 = inlined_call_operand.vmem [shape: bf16[512,8], index: 0, kind: input, shape index: {}]   ;;  %s837_s1 = inlined_call_operand.vmem [shape: bf16[8,16], index: 1, kind: input, shape index: {}]   ;;  %s838_s2 = inlined_call_operand.vmem [shape: f32[1,16], index: 2, kind: input, shape index: {}]   ;;  %s839_s3 = inlined_call_operand.vmem [shape: f32[1,16], index: 3, kind: input, shape index: {}]   ;;  %s840_s4 = inlined_call_operand.vmem [shape: bf16[512,16], index: 4, kind: output, shape index: {}]  }
   0x1 LB: > { %s584_s16 = sadd.s32 4294967295, %s698_s15   ;;  %p588_p0 = scmp.ge.s32.totalorder %s698_s15, 1  ;;  %s698_s15 = sphi %s725_s15, %s14_s15  }
   0x2   : > { %p163_p1 = scmp.lt.s32.totalorder %s698_s15, 5 }
   0x4   : > { %p164_p2 = pnand %p588_p0, %p163_p1 }
   0x5   : > { %v218_v0 = vld [vmem:[%s837_s1] sm:$0xf] (!%p164_p2)  ;;  %vm284_vm0 = vcmask (!%p164_p2), 1043456   ;;  %s589_s19 = sshll.u32 (!%p164_p2), %s584_s16, 4  ;;  %vm259_vm1 = vcmask (!%p164_p2), 64512   ;;  %vm511_vm2 = vcmask (!%p164_p2), 125952  }
   0x6   : > { %167 = sbr.rel (%p164_p2) target bundleno = 252 (0xfc), region = 36  ;;  %674 = vmatprep.subr.msk.bf16.mxu0 (!%p164_p2), %vm284_vm0, %v218_v0  ;;  %675 = vmatprep.subr.msk.bf16.mxu1 (!%p164_p2), %vm284_vm0, %v218_v0  ;;  %v286_v1 = vsel (!%p164_p2), %vm284_vm0, %v218_v0, 0  ;;  %p190_p3 = scmp.lt.s32.totalorder (!%p164_p2), %s589_s19, 63  ;;  %v755_v10 = vld [vmem:[%s838_s2] ss:$0 sm:$0xff] (!%p164_p2) }
   0x7   : > { %655 = vmatpush3.bf16.msra.mxu0 (!%p164_p2), %v286_v1  ;;  %673 = vmatpush3.bf16.msra.mxu1 (!%p164_p2), %v286_v1  ;;  %v760_v12 = vld [vmem:[%s839_s3] ss:$0 sm:$0xff] (!%p164_p2) }
   0xd   : > { %s842_s19 = smov (!%p190_p3, %s589_s19), 63 }
   0xe   : > { %s590_s20 = sshll.u32 %s842_s19, 2 }
   0xf   : > { %s193_s23 = scalar_lea.vmem %s836_s0, %s590_s20  ;;  %s780_s30 = scalar_lea.vmem %s840_s4, %s590_s20 }
  0x10   : > { %v684_v2 = vld [vmem:[%s193_s23] sm:$0xff]   ;;  %v686_v4 = vld [vmem:[%s193_s23 + $0x8] sm:$0xff]   ;;  %v688_v6 = vld [vmem:[%s193_s23 + $0x10] sm:$0xff]  }
  0x11   : > { %v685_v3 = vld [vmem:[%s193_s23 + $0x20] sm:$0xff]   ;;  %656 = vmatprep.mubr.msk.bf16.mxu0 %vm259_vm1, %v684_v2  ;;  %v687_v5 = vld [vmem:[%s193_s23 + $0x28] sm:$0xff]   ;;  %v689_v7 = vld [vmem:[%s193_s23 + $0x30] sm:$0xff]  }
  0x12   : > { %664 = vmatprep.mubr.msk.bf16.mxu1 %vm259_vm1, %v685_v3  ;;  %657 = vmatmul.mubr.msk.bf16.vlgmr.msra.gmra.mrb[0].mxu0 %vm259_vm1, %v686_v4  ;;  %v690_v8 = vld [vmem:[%s193_s23 + $0x18] sm:$0xff]  }
  0x13   : > { %665 = vmatmul.mubr.msk.bf16.vlgmr.msra.gmra.mrb[0].mxu1 %vm259_vm1, %v687_v5  ;;  %660 = vmatprep.mubr.msk.bf16.mxu0 %vm259_vm1, %v688_v6  ;;  %v691_v9 = vld [vmem:[%s193_s23 + $0x38] sm:$0xff]  }
  0x14   : > { %668 = vmatprep.mubr.msk.bf16.mxu1 %vm259_vm1, %v689_v7 }
  0x1a   : > { %661 = vmatmul.mubr.msk.bf16.gmra.mrb[4].mxu0 %vm259_vm1, %v690_v8 }
  0x1b   : > { %669 = vmatmul.mubr.msk.bf16.gmra.mrb[4].mxu1 %vm259_vm1, %v691_v9 }
  0xe5   : > { %v658_v11 = vpop.f32.mrb[0].mxu0 }
  0xe6   : > { %v394_v13 = vmul.f32 %v658_v11, %v755_v10  ;;  %v666_v14 = vpop.f32.mrb[0].mxu1  ;;  %v322_v15 = vpop.f32.mrb[1].mxu0 }
  0xe7   : > { %v402_v16 = vmul.f32 %v666_v14, %v755_v10  ;;  %v392_v17 = vmul.f32 %v755_v10, %v322_v15  ;;  %v354_v18 = vpop.f32.mrb[1].mxu1  ;;  %v659_v19 = vpop.f32.mrb[2].mxu0 }
  0xe8   : > { %v417_v20 = vadd.f32 %v760_v12, %v394_v13  ;;  %v400_v21 = vmul.f32 %v755_v10, %v354_v18  ;;  %v395_v22 = vmul.f32 %v659_v19, %v755_v10  ;;  %v667_v23 = vpop.f32.mrb[2].mxu1  ;;  %v325_v24 = vpop.f32.mrb[3].mxu0 }
  0xe9   : > { %v425_v25 = vadd.f32 %v760_v12, %v402_v16  ;;  %v415_v26 = vadd.f32 %v760_v12, %v392_v17  ;;  %v403_v27 = vmul.f32 %v667_v23, %v755_v10  ;;  %v393_v28 = vmul.f32 %v755_v10, %v325_v24  ;;  %v357_v29 = vpop.f32.mrb[3].mxu1 }
  0xea   : > { %v433_v30 = vmax.f32 %v417_v20, 0.0  ;;  %v423_v31 = vadd.f32 %v760_v12, %v400_v21  ;;  %v418_v32 = vadd.f32 %v760_v12, %v395_v22  ;;  %v401_v33 = vmul.f32 %v755_v10, %v357_v29 }
  0xeb   : > { %v441_v34 = vmax.f32 %v425_v25, 0.0  ;;  %v431_v35 = vmax.f32 %v415_v26, 0.0  ;;  %v426_v36 = vadd.f32 %v760_v12, %v403_v27  ;;  %v416_v37 = vadd.f32 %v760_v12, %v393_v28 }
  0xec   : > { %v631_v38 = vpack.c.bf16 %v433_v30, %v433_v30  ;;  %v439_v39 = vmax.f32 %v423_v31, 0.0  ;;  %v434_v40 = vmax.f32 %v418_v32, 0.0  ;;  %v424_v41 = vadd.f32 %v760_v12, %v401_v33 }
  0xed   : > { %v639_v42 = vpack.c.bf16 %v441_v34, %v441_v34  ;;  %v629_v43 = vpack.c.bf16 %v431_v35, %v431_v35  ;;  %v442_v44 = vmax.f32 %v426_v36, 0.0  ;;  %v432_v45 = vmax.f32 %v416_v37, 0.0  ;;  %v662_v46 = vpop.f32.mrb[4].mxu0 }
  0xee   : > { %514 = vst.msk [vmem:[%s780_s30 + $0x8] sm:$0xf] %vm511_vm2, %v631_v38  ;;  %v637_v47 = vpack.c.bf16 %v439_v39, %v439_v39  ;;  %v632_v48 = vpack.c.bf16 %v434_v40, %v434_v40  ;;  %v440_v49 = vmax.f32 %v424_v41, 0.0  ;;  %v398_v50 = vmul.f32 %v662_v46, %v755_v10  ;;  %v670_v51 = vpop.f32.mrb[4].mxu1  ;;  %v338_v52 = vpop.f32.mrb[5].mxu0 }
  0xef   : > { %522 = vst.msk [vmem:[%s780_s30 + $0x28] sm:$0xf] %vm511_vm2, %v639_v42  ;;  %512 = vst.msk [vmem:[%s780_s30] sm:$0xf] %vm511_vm2, %v629_v43  ;;  %v640_v53 = vpack.c.bf16 %v442_v44, %v442_v44  ;;  %v630_v54 = vpack.c.bf16 %v432_v45, %v432_v45  ;;  %v406_v55 = vmul.f32 %v670_v51, %v755_v10  ;;  %v370_v57 = vpop.f32.mrb[5].mxu1  ;;  %v663_v58 = vpop.f32.mrb[6].mxu0 }
  0xf0   : > { %v396_v56 = vmul.f32 %v755_v10, %v338_v52  ;;  %520 = vst.msk [vmem:[%s780_s30 + $0x20] sm:$0xf] %vm511_vm2, %v637_v47  ;;  %515 = vst.msk [vmem:[%s780_s30 + $0xc] sm:$0xf] %vm511_vm2, %v632_v48  ;;  %v638_v59 = vpack.c.bf16 %v440_v49, %v440_v49  ;;  %v421_v60 = vadd.f32 %v760_v12, %v398_v50  ;;  %v671_v63 = vpop.f32.mrb[6].mxu1  ;;  %v341_v0 = vpop.f32.mrb[7].mxu0 }
  0xf1   : > { %v404_v61 = vmul.f32 %v755_v10, %v370_v57  ;;  %v399_v62 = vmul.f32 %v663_v58, %v755_v10  ;;  %523 = vst.msk [vmem:[%s780_s30 + $0x2c] sm:$0xf] %vm511_vm2, %v640_v53  ;;  %513 = vst.msk [vmem:[%s780_s30 + $0x4] sm:$0xf] %vm511_vm2, %v630_v54  ;;  %v429_v1 = vadd.f32 %v760_v12, %v406_v55  ;;  %v373_v5 = vpop.f32.mrb[7].mxu1 }
  0xf2   : > { %v419_v2 = vadd.f32 %v760_v12, %v396_v56  ;;  %v407_v3 = vmul.f32 %v671_v63, %v755_v10  ;;  %v397_v4 = vmul.f32 %v755_v10, %v341_v0  ;;  %521 = vst.msk [vmem:[%s780_s30 + $0x24] sm:$0xf] %vm511_vm2, %v638_v59  ;;  %v437_v6 = vmax.f32 %v421_v60, 0.0 }
  0xf3   : > { %v427_v7 = vadd.f32 %v760_v12, %v404_v61  ;;  %v422_v8 = vadd.f32 %v760_v12, %v399_v62  ;;  %v405_v9 = vmul.f32 %v755_v10, %v373_v5  ;;  %v445_v11 = vmax.f32 %v429_v1, 0.0 }
  0xf4   : > { %v435_v13 = vmax.f32 %v419_v2, 0.0  ;;  %v430_v14 = vadd.f32 %v760_v12, %v407_v3  ;;  %v420_v15 = vadd.f32 %v760_v12, %v397_v4  ;;  %v635_v16 = vpack.c.bf16 %v437_v6, %v437_v6 }
  0xf5   : > { %v443_v17 = vmax.f32 %v427_v7, 0.0  ;;  %v438_v18 = vmax.f32 %v422_v8, 0.0  ;;  %v428_v19 = vadd.f32 %v760_v12, %v405_v9  ;;  %v643_v20 = vpack.c.bf16 %v445_v11, %v445_v11 }
  0xf6   : > { %v633_v21 = vpack.c.bf16 %v435_v13, %v435_v13  ;;  %v446_v10 = vmax.f32 %v430_v14, 0.0  ;;  %v436_v22 = vmax.f32 %v420_v15, 0.0  ;;  %518 = vst.msk [vmem:[%s780_s30 + $0x18] sm:$0xf] %vm511_vm2, %v635_v16 }
  0xf7   : > { %v641_v23 = vpack.c.bf16 %v443_v17, %v443_v17  ;;  %v636_v24 = vpack.c.bf16 %v438_v18, %v438_v18  ;;  %v444_v25 = vmax.f32 %v428_v19, 0.0  ;;  %526 = vst.msk [vmem:[%s780_s30 + $0x38] sm:$0xf] %vm511_vm2, %v643_v20 }
  0xf8   : > { %516 = vst.msk [vmem:[%s780_s30 + $0x10] sm:$0xf] %vm511_vm2, %v633_v21  ;;  %v644_v26 = vpack.c.bf16 %v446_v10, %v446_v10  ;;  %v634_v27 = vpack.c.bf16 %v436_v22, %v436_v22 }
  0xf9   : > { %524 = vst.msk [vmem:[%s780_s30 + $0x30] sm:$0xf] %vm511_vm2, %v641_v23  ;;  %519 = vst.msk [vmem:[%s780_s30 + $0x1c] sm:$0xf] %vm511_vm2, %v636_v24  ;;  %v642_v12 = vpack.c.bf16 %v444_v25, %v444_v25 }
  0xfa   : > { %527 = vst.msk [vmem:[%s780_s30 + $0x3c] sm:$0xf] %vm511_vm2, %v644_v26  ;;  %517 = vst.msk [vmem:[%s780_s30 + $0x14] sm:$0xf] %vm511_vm2, %v634_v27 }
  0xfb   : > { %525 = vst.msk [vmem:[%s780_s30 + $0x34] sm:$0xf] %vm511_vm2, %v642_v12 }
  0xfc PF: > { %s14_s15 = sadd.s32 1, %s698_s15  }
  0xfd   : > { %p11_p4 = scmp.ge.s32.totalorder %s14_s15, 6  }
  0xff   :  { %13 = sbr.rel (!%p11_p4) target bundleno = 1 (0x1), region = 66 }

// kernel: block_forward.4
= control target key start
LH: loop header
LB: loop body
LE: loop exit
PB: predicated region body
PF: predicated region fallthrough
CT: control target
= control target key end

     0   :  { %s860_s15 = smov 0   ;;  %s1010_s0 = inlined_call_operand.vmem [shape: bf16[512,144], index: 0, kind: input, shape index: {}]   ;;  %s1011_s1 = inlined_call_operand.vmem [shape: bf16[144,16], index: 1, kind: input, shape index: {}]   ;;  %s1012_s2 = inlined_call_operand.vmem [shape: f32[1,16], index: 2, kind: input, shape index: {}]   ;;  %s1013_s3 = inlined_call_operand.vmem [shape: f32[1,16], index: 3, kind: input, shape index: {}]   ;;  %s1014_s4 = inlined_call_operand.vmem [shape: bf16[512,16], index: 4, kind: output, shape index: {}]  }
   0x1 LB: > { %s686_s16 = sadd.s32 4294967295, %s832_s15   ;;  %p690_p0 = scmp.ge.s32.totalorder %s832_s15, 1  ;;  %s832_s15 = sphi %s860_s15, %s14_s15  }
   0x2   : > { %p164_p1 = scmp.lt.s32.totalorder %s832_s15, 5 }
   0x4   : > { %p165_p2 = pnand %p690_p0, %p164_p1 }
   0x5   : > { %v793_v0 = vld [vmem:[%s1011_s1] sm:$0xff] (!%p165_p2)   ;;  %v834_v1 = vmov (!%p165_p2), 0   ;;  %s691_s19 = sshll.u32 (!%p165_p2), %s686_s16, 4  ;;  %v794_v2 = vld [vmem:[%s1011_s1 + $0x8] sm:$0xff] (!%p165_p2)   ;;  %v795_v3 = vld [vmem:[%s1011_s1 + $0x10] sm:$0xff] (!%p165_p2)   ;;  %vm365_vm0 = vcmask (!%p165_p2), 130048  }
   0x6   : > { %168 = sbr.rel (%p165_p2) target bundleno = 289 (0x121), region = 36  ;;  %390 = vmatprep.subr.bf16.mxu0 (!%p165_p2), %v834_v1  ;;  %766 = vmatprep.subr.bf16.mxu1 (!%p165_p2), %v834_v1  ;;  %p192_p3 = scmp.lt.s32.totalorder (!%p165_p2), %s691_s19, 63  ;;  %v796_v4 = vld [vmem:[%s1011_s1 + $0x18] sm:$0xff] (!%p165_p2)   ;;  %v797_v7 = vld [vmem:[%s1011_s1 + $0x20] sm:$0xff] (!%p165_p2)   ;;  %v798_v8 = vld [vmem:[%s1011_s1 + $0x28] sm:$0xff] (!%p165_p2)   ;;  %vm613_vm1 = vcmask (!%p165_p2), 125952  }
   0x7   : > { %391 = vmatpush1.bf16.msra.mxu0 (!%p165_p2), %v793_v0  ;;  %775 = vmatpush1.bf16.msra.mxu1 (!%p165_p2), %v793_v0  ;;  %v799_v9 = vld [vmem:[%s1011_s1 + $0x30] sm:$0xff] (!%p165_p2)   ;;  %v800_v10 = vld [vmem:[%s1011_s1 + $0x38] sm:$0xff] (!%p165_p2)   ;;  %v801_v11 = vld [vmem:[%s1011_s1 + $0x40] sm:$0xff] (!%p165_p2)  }
   0x8   : > { %392 = vmatprep.subr.bf16.mxu0 (!%p165_p2), %v834_v1  ;;  %767 = vmatprep.subr.bf16.mxu1 (!%p165_p2), %v834_v1  ;;  %v930_v26 = vld [vmem:[%s1012_s2] ss:$0 sm:$0xff] (!%p165_p2) }
   0x9   : > { %v935_v28 = vld [vmem:[%s1013_s3] ss:$0 sm:$0xff] (!%p165_p2) }
   0xb   : > { %393 = vmatpush1.bf16.msra.mxu0 (!%p165_p2), %v794_v2  ;;  %776 = vmatpush1.bf16.msra.mxu1 (!%p165_p2), %v794_v2 }
   0xc   : > { %394 = vmatprep.subr.bf16.mxu0 (!%p165_p2), %v834_v1  ;;  %768 = vmatprep.subr.bf16.mxu1 (!%p165_p2), %v834_v1 }
   0xd   : > { %s1016_s19 = smov (!%p192_p3, %s691_s19), 63 }
   0xe   : > { %s749_s24 = sshll.u32 %s1016_s19, 3  ;;  %s695_s20 = sshll.u32 %s1016_s19, 2 }
   0xf   : > { %s883_s27 = scalar_lea.vmem %s1010_s0, %s749_s24  ;;  %395 = vmatpush1.bf16.msra.mxu0 %v795_v3  ;;  %777 = vmatpush1.bf16.msra.mxu1 %v795_v3  ;;  %s949_s19 = scalar_lea.vmem %s1014_s4, %s695_s20 }
  0x10   : > { %v804_v5 = vld [vmem:[%s883_s27 + $0x4] ss:$8 sps:$4 sm:$0xff]   ;;  %396 = vmatprep.subr.bf16.mxu0 %v834_v1  ;;  %769 = vmatprep.subr.bf16.mxu1 %v834_v1  ;;  %v802_v12 = vld [vmem:[%s883_s27] ss:$8 sps:$4 sm:$0xff]   ;;  %v808_v14 = vld [vmem:[%s883_s27 + $0x14] ss:$8 sps:$4 sm:$0xff]  }
  0x11   : > { %v807_v6 = vld [vmem:[%s883_s27 + $0x44] ss:$8 sps:$4 sm:$0xff]   ;;  %721 = vmatprep.mubr.msk.bf16.mxu0 %vm365_vm0, %v804_v5  ;;  %v805_v13 = vld [vmem:[%s883_s27 + $0x40] ss:$8 sps:$4 sm:$0xff]   ;;  %v810_v15 = vld [vmem:[%s883_s27 + $0x54] ss:$8 sps:$4 sm:$0xff]  }
  0x12   : > { %725 = vmatprep.mubr.msk.bf16.mxu1 %vm365_vm0, %v807_v6  ;;  %v812_v16 = vld [vmem:[%s883_s27 + $0x10] ss:$8 sps:$4 sm:$0xff]   ;;  %v814_v18 = vld [vmem:[%s883_s27 + $0x24] ss:$8 sps:$4 sm:$0xff]   ;;  %v818_v20 = vld [vmem:[%s883_s27 + $0x20] ss:$8 sps:$4 sm:$0xff]  }
  0x13   : > { %397 = vmatpush1.bf16.msra.mxu0 %v796_v4  ;;  %778 = vmatpush1.bf16.msra.mxu1 %v796_v4  ;;  %v813_v17 = vld [vmem:[%s883_s27 + $0x50] ss:$8 sps:$4 sm:$0xff]   ;;  %v816_v19 = vld [vmem:[%s883_s27 + $0x64] ss:$8 sps:$4 sm:$0xff]   ;;  %v819_v21 = vld [vmem:[%s883_s27 + $0x60] ss:$8 sps:$4 sm:$0xff]  }
  0x14   : > { %398 = vmatprep.subr.bf16.mxu0 %v834_v1  ;;  %770 = vmatprep.subr.bf16.mxu1 %v834_v1  ;;  %v820_v22 = vld [vmem:[%s883_s27 + $0x34] ss:$8 sps:$4 sm:$0xff]   ;;  %v824_v24 = vld [vmem:[%s883_s27 + $0x30] ss:$8 sps:$4 sm:$0xff]  }
  0x15   : > { %v822_v23 = vld [vmem:[%s883_s27 + $0x74] ss:$8 sps:$4 sm:$0xff]   ;;  %v825_v25 = vld [vmem:[%s883_s27 + $0x70] ss:$8 sps:$4 sm:$0xff]  }
  0x17   : > { %399 = vmatpush1.bf16.msra.mxu0 %v797_v7  ;;  %779 = vmatpush1.bf16.msra.mxu1 %v797_v7 }
  0x18   : > { %400 = vmatprep.subr.bf16.mxu0 %v834_v1  ;;  %771 = vmatprep.subr.bf16.mxu1 %v834_v1 }
  0x1b   : > { %401 = vmatpush1.bf16.msra.mxu0 %v798_v8  ;;  %780 = vmatpush1.bf16.msra.mxu1 %v798_v8 }
  0x1c   : > { %402 = vmatprep.subr.bf16.mxu0 %v834_v1  ;;  %772 = vmatprep.subr.bf16.mxu1 %v834_v1 }
  0x1f   : > { %403 = vmatpush1.bf16.msra.mxu0 %v799_v9  ;;  %781 = vmatpush1.bf16.msra.mxu1 %v799_v9 }
  0x20   : > { %404 = vmatprep.subr.bf16.mxu0 %v834_v1  ;;  %773 = vmatprep.subr.bf16.mxu1 %v834_v1 }
  0x23   : > { %405 = vmatpush1.bf16.msra.mxu0 %v800_v10  ;;  %782 = vmatpush1.bf16.msra.mxu1 %v800_v10 }
  0x24   : > { %406 = vmatprep.subr.bf16.mxu0 %v834_v1  ;;  %774 = vmatprep.subr.bf16.mxu1 %v834_v1 }
  0x27   : > { %407 = vmatpush1.bf16.msra.mxu0 %v801_v11  ;;  %783 = vmatpush1.bf16.msra.mxu1 %v801_v11 }
  0x2a   : > { %423 = vmatmul.mubr.bf16.vlgmr.msra.gmra.mrb[0].mxu0 %v802_v12  ;;  %455 = vmatmul.mubr.bf16.vlgmr.msra.gmra.mrb[0].mxu1 %v805_v13 }
  0x2b   : > { %722 = vmatprep.mubr.msk.bf16.mxu0 %vm365_vm0, %v808_v14  ;;  %726 = vmatprep.mubr.msk.bf16.mxu1 %vm365_vm0, %v810_v15 }
  0x32   : > { %431 = vmatmul.mubr.bf16.gmra.mrb[4].mxu0 %v812_v16  ;;  %463 = vmatmul.mubr.bf16.gmra.mrb[4].mxu1 %v813_v17 }
  0x33   : > { %723 = vmatprep.mubr.msk.bf16.mxu0 %vm365_vm0, %v814_v18  ;;  %727 = vmatprep.mubr.msk.bf16.mxu1 %vm365_vm0, %v816_v19 }
  0x3a   : > { %439 = vmatmul.mubr.bf16.gmra.mrb[8].mxu0 %v818_v20  ;;  %471 = vmatmul.mubr.bf16.gmra.mrb[8].mxu1 %v819_v21 }
  0x3b   : > { %724 = vmatprep.mubr.msk.bf16.mxu0 %vm365_vm0, %v820_v22  ;;  %728 = vmatprep.mubr.msk.bf16.mxu1 %vm365_vm0, %v822_v23 }
  0x42   : > { %447 = vmatmul.mubr.bf16.gmra.mrb[12].mxu0 %v824_v24  ;;  %479 = vmatmul.mubr.bf16.gmra.mrb[12].mxu1 %v825_v25 }
  0xfd   : > { %v424_v27 = vpop.f32.mrb[0].mxu0  ;;  %v456_v29 = vpop.f32.mrb[0].mxu1 }
  0xfe   : > { %v494_v30 = vmul.f32 %v930_v26, %v424_v27  ;;  %v502_v31 = vmul.f32 %v930_v26, %v456_v29  ;;  %v426_v32 = vpop.f32.mrb[1].mxu0  ;;  %v458_v33 = vpop.f32.mrb[1].mxu1 }
  0xff   : > { %v427_v34 = vpop.f32.mrb[2].mxu0  ;;  %v459_v35 = vpop.f32.mrb[2].mxu1 }
 0x100   : > { %v517_v36 = vadd.f32 %v935_v28, %v494_v30  ;;  %v525_v37 = vadd.f32 %v935_v28, %v502_v31  ;;  %v495_v38 = vmul.f32 %v930_v26, %v427_v34  ;;  %v503_v39 = vmul.f32 %v930_v26, %v459_v35  ;;  %v429_v40 = vpop.f32.mrb[3].mxu0  ;;  %v461_v41 = vpop.f32.mrb[3].mxu1 }
 0x102   : > { %v533_v42 = vmax.f32 %v517_v36, 0.0  ;;  %v541_v43 = vmax.f32 %v525_v37, 0.0  ;;  %v518_v44 = vadd.f32 %v935_v28, %v495_v38  ;;  %v526_v45 = vadd.f32 %v935_v28, %v503_v39 }
 0x104   : > { %v750_v46 = vpack.c.bf16 %v533_v42, %v533_v42  ;;  %v758_v47 = vpack.c.bf16 %v541_v43, %v541_v43  ;;  %v534_v48 = vmax.f32 %v518_v44, 0.0  ;;  %v542_v49 = vmax.f32 %v526_v45, 0.0 }
 0x105   : > { %v432_v50 = vpop.f32.mrb[4].mxu0  ;;  %v464_v51 = vpop.f32.mrb[4].mxu1 }
 0x106   : > { %614 = vst.msk [vmem:[%s949_s19] sm:$0xf] %vm613_vm1, %v750_v46  ;;  %622 = vst.msk [vmem:[%s949_s19 + $0x20] sm:$0xf] %vm613_vm1, %v758_v47  ;;  %v751_v52 = vpack.c.bf16 %v534_v48, %v534_v48  ;;  %v759_v53 = vpack.c.bf16 %v542_v49, %v542_v49  ;;  %v496_v54 = vmul.f32 %v930_v26, %v432_v50  ;;  %v434_v56 = vpop.f32.mrb[5].mxu0  ;;  %v466_v57 = vpop.f32.mrb[5].mxu1 }
 0x107   : > { %v504_v55 = vmul.f32 %v930_v26, %v464_v51  ;;  %v435_v58 = vpop.f32.mrb[6].mxu0  ;;  %v467_v59 = vpop.f32.mrb[6].mxu1 }
 0x108   : > { %615 = vst.msk [vmem:[%s949_s19 + $0x4] sm:$0xf] %vm613_vm1, %v751_v52  ;;  %623 = vst.msk [vmem:[%s949_s19 + $0x24] sm:$0xf] %vm613_vm1, %v759_v53  ;;  %v519_v60 = vadd.f32 %v935_v28, %v496_v54  ;;  %v497_v62 = vmul.f32 %v930_v26, %v435_v58  ;;  %v505_v63 = vmul.f32 %v930_v26, %v467_v59  ;;  %v437_v0 = vpop.f32.mrb[7].mxu0  ;;  %v469_v1 = vpop.f32.mrb[7].mxu1 }
 0x109   : > { %v527_v61 = vadd.f32 %v935_v28, %v504_v55 }
 0x10a   : > { %v535_v2 = vmax.f32 %v519_v60, 0.0  ;;  %v520_v4 = vadd.f32 %v935_v28, %v497_v62  ;;  %v528_v5 = vadd.f32 %v935_v28, %v505_v63 }
 0x10b   : > { %v543_v3 = vmax.f32 %v527_v61, 0.0 }
 0x10c   : > { %v752_v6 = vpack.c.bf16 %v535_v2, %v535_v2  ;;  %v536_v8 = vmax.f32 %v520_v4, 0.0  ;;  %v544_v9 = vmax.f32 %v528_v5, 0.0 }
 0x10d   : > { %v760_v7 = vpack.c.bf16 %v543_v3, %v543_v3  ;;  %v440_v10 = vpop.f32.mrb[8].mxu0  ;;  %v472_v11 = vpop.f32.mrb[8].mxu1 }
 0x10e   : > { %616 = vst.msk [vmem:[%s949_s19 + $0x8] sm:$0xf] %vm613_vm1, %v752_v6  ;;  %v753_v12 = vpack.c.bf16 %v536_v8, %v536_v8  ;;  %v761_v13 = vpack.c.bf16 %v544_v9, %v544_v9  ;;  %v498_v14 = vmul.f32 %v930_v26, %v440_v10  ;;  %v506_v15 = vmul.f32 %v930_v26, %v472_v11  ;;  %v442_v16 = vpop.f32.mrb[9].mxu0  ;;  %v474_v17 = vpop.f32.mrb[9].mxu1 }
 0x10f   : > { %624 = vst.msk [vmem:[%s949_s19 + $0x28] sm:$0xf] %vm613_vm1, %v760_v7  ;;  %v443_v18 = vpop.f32.mrb[10].mxu0  ;;  %v475_v19 = vpop.f32.mrb[10].mxu1 }
 0x110   : > { %617 = vst.msk [vmem:[%s949_s19 + $0xc] sm:$0xf] %vm613_vm1, %v753_v12  ;;  %625 = vst.msk [vmem:[%s949_s19 + $0x2c] sm:$0xf] %vm613_vm1, %v761_v13  ;;  %v521_v20 = vadd.f32 %v935_v28, %v498_v14  ;;  %v529_v21 = vadd.f32 %v935_v28, %v506_v15  ;;  %v499_v22 = vmul.f32 %v930_v26, %v443_v18  ;;  %v445_v24 = vpop.f32.mrb[11].mxu0  ;;  %v477_v25 = vpop.f32.mrb[11].mxu1 }
 0x111   : > { %v507_v23 = vmul.f32 %v930_v26, %v475_v19 }
 0x112   : > { %v537_v27 = vmax.f32 %v521_v20, 0.0  ;;  %v545_v29 = vmax.f32 %v529_v21, 0.0  ;;  %v522_v30 = vadd.f32 %v935_v28, %v499_v22 }
 0x113   : > { %v530_v31 = vadd.f32 %v935_v28, %v507_v23 }
 0x114   : > { %v754_v32 = vpack.c.bf16 %v537_v27, %v537_v27  ;;  %v762_v33 = vpack.c.bf16 %v545_v29, %v545_v29  ;;  %v538_v34 = vmax.f32 %v522_v30, 0.0 }
 0x115   : > { %v546_v35 = vmax.f32 %v530_v31, 0.0  ;;  %v448_v36 = vpop.f32.mrb[12].mxu0  ;;  %v480_v37 = vpop.f32.mrb[12].mxu1 }
 0x116   : > { %618 = vst.msk [vmem:[%s949_s19 + $0x10] sm:$0xf] %vm613_vm1, %v754_v32  ;;  %626 = vst.msk [vmem:[%s949_s19 + $0x30] sm:$0xf] %vm613_vm1, %v762_v33  ;;  %v755_v38 = vpack.c.bf16 %v538_v34, %v538_v34  ;;  %v500_v40 = vmul.f32 %v930_v26, %v448_v36  ;;  %v508_v41 = vmul.f32 %v930_v26, %v480_v37  ;;  %v450_v42 = vpop.f32.mrb[13].mxu0  ;;  %v482_v43 = vpop.f32.mrb[13].mxu1 }
 0x117   : > { %v763_v39 = vpack.c.bf16 %v546_v35, %v546_v35  ;;  %v451_v44 = vpop.f32.mrb[14].mxu0  ;;  %v483_v45 = vpop.f32.mrb[14].mxu1 }
 0x118   : > { %619 = vst.msk [vmem:[%s949_s19 + $0x14] sm:$0xf] %vm613_vm1, %v755_v38  ;;  %v523_v46 = vadd.f32 %v935_v28, %v500_v40  ;;  %v531_v47 = vadd.f32 %v935_v28, %v508_v41  ;;  %v501_v48 = vmul.f32 %v930_v26, %v451_v44  ;;  %v509_v49 = vmul.f32 %v930_v26, %v483_v45  ;;  %v453_v50 = vpop.f32.mrb[15].mxu0  ;;  %v485_v51 = vpop.f32.mrb[15].mxu1 }
 0x119   : > { %627 = vst.msk [vmem:[%s949_s19 + $0x34] sm:$0xf] %vm613_vm1, %v763_v39 }
 0x11a   : > { %v539_v52 = vmax.f32 %v523_v46, 0.0  ;;  %v547_v53 = vmax.f32 %v531_v47, 0.0  ;;  %v524_v54 = vadd.f32 %v935_v28, %v501_v48  ;;  %v532_v55 = vadd.f32 %v935_v28, %v509_v49 }
 0x11c   : > { %v756_v56 = vpack.c.bf16 %v539_v52, %v539_v52  ;;  %v764_v57 = vpack.c.bf16 %v547_v53, %v547_v53  ;;  %v540_v58 = vmax.f32 %v524_v54, 0.0  ;;  %v548_v59 = vmax.f32 %v532_v55, 0.0 }
 0x11e   : > { %620 = vst.msk [vmem:[%s949_s19 + $0x18] sm:$0xf] %vm613_vm1, %v756_v56  ;;  %628 = vst.msk [vmem:[%s949_s19 + $0x38] sm:$0xf] %vm613_vm1, %v764_v57  ;;  %v757_v60 = vpack.c.bf16 %v540_v58, %v540_v58  ;;  %v765_v61 = vpack.c.bf16 %v548_v59, %v548_v59 }
 0x120   : > { %621 = vst.msk [vmem:[%s949_s19 + $0x1c] sm:$0xf] %vm613_vm1, %v757_v60  ;;  %629 = vst.msk [vmem:[%s949_s19 + $0x3c] sm:$0xf] %vm613_vm1, %v765_v61 }
 0x121 PF: > { %s14_s15 = sadd.s32 1, %s832_s15  }
 0x122   : > { %p11_p4 = scmp.ge.s32.totalorder %s14_s15, 6  }
 0x124   :  { %13 = sbr.rel (!%p11_p4) target bundleno = 1 (0x1), region = 66 }

// kernel: block_forward.5
= control target key start
LH: loop header
LB: loop body
LE: loop exit
PB: predicated region body
PF: predicated region fallthrough
CT: control target
= control target key end

     0   :  { %8 = vsyncpa [#allocation3], 0  ;;  %s847_s0 = inlined_call_operand.vmem [shape: bf16[512,24], index: 0, kind: input, shape index: {}]   ;;  %s848_s1 = inlined_call_operand.vmem [shape: bf16[24,32], index: 1, kind: input, shape index: {}]   ;;  %s849_s2 = inlined_call_operand.vmem [shape: f32[1,32], index: 2, kind: input, shape index: {}]   ;;  %s850_s3 = inlined_call_operand.hbm [shape: f32[512,32], index: 3, kind: output, shape index: {}]  }
   0x1   :  { %10 = vsyncpa [#allocation3 + $0x1], 0  ;;  %s689_s12 = smov 0   ;;  %s691_s13 = smov 0  }
   0x2   :  { %s693_s14 = smov 0   ;;  %s695_s15 = smov 0  }
   0x3 LB: > { %s710_s16 = sadd.s32 4294967295, %s664_s15   ;;  %s483_s17 = sadd.s32 4294967294, %s664_s15   ;;  %s664_s15 = sphi %s695_s15, %s856_s15   ;;  %s660_s14 = sphi %s693_s14, %s855_s14   ;;  %s656_s13 = sphi %s691_s13, %s854_s13   ;;  %s652_s12 = sphi %s689_s12, %s853_s12  }
   0x4   : > { %s714_s18 = sadd.s32 1, %s664_s15   ;;  %s91_s19 = sadd.s32 1, %s660_s14 }
   0x5   : > { %s88_s20 = ssub.s32 %s664_s15, %s714_s18  ;;  %p101_p0 = scmp.ne.s32.totalorder %s660_s14, %s656_s13 }
   0x6   : > { %p89_p1 = scmp.eq.s32.totalorder %s88_s20, 0  ;;  %p102_p2 = scmp.eq.s32.totalorder %s710_s16, 3 }
   0x7   : > { %p107_p3 = scmp.ne.s32.totalorder %s656_s13, %s652_s12  ;;  %p108_p4 = scmp.eq.s32.totalorder %s483_s17, 3 }
   0x8   : > { %s725_s21 = scalar_select %p89_p1, %s660_s14, %s91_s19  }
   0x9   : > { %p727_p5 = por %p102_p2, %p101_p0  ;;  %p731_p6 = por %p108_p4, %p107_p3 }
   0xa   : > { %p486_p7 = scmp.ge.s32.totalorder %s664_s15, 1  ;;  %p141_p8 = scmp.lt.s32.totalorder %s664_s15, 5 }
   0xc   : > { %p142_p9 = pnand %p486_p7, %p141_p8 }
   0xd   : > { %v592_v0 = vld [vmem:[%s848_s1] sm:$0xff] (!%p142_p9)   ;;  %v593_v1 = vld [vmem:[%s848_s1 + $0x8] ss:$0 sps:$4 sm:$0xff] (!%p142_p9)   ;;  %vm273_vm0 = vcmask (!%p142_p9), 1043456   ;;  %s488_s28 = sshll.u32 (!%p142_p9), %s710_s16, 4  ;;  %vm248_vm1 = vcmask (!%p142_p9), 195584  }
   0xe   : > { %145 = sbr.rel (%p142_p9) target bundleno = 269 (0x10d), region = 32  ;;  %525 = vmatprep.subr.bf16.mxu0 (!%p142_p9), %v592_v0  ;;  %545 = vmatprep.subr.bf16.mxu1 (!%p142_p9), %v592_v0  ;;  %p166_p10 = scmp.lt.s32.totalorder (!%p142_p9), %s488_s28, 63  ;;  %v275_v2 = vsel (!%p142_p9), %vm273_vm0, %v593_v1, 0  ;;  %v490_v11 = vld [vmem:[%s849_s2] ss:$0 sm:$0xff] (!%p142_p9)  ;;  %vm390_vm2 = vcmask (!%p142_p9), 261120  }
   0xf   : > { %526 = vmatpush3.bf16.msra.mxu0 (!%p142_p9), %v592_v0  ;;  %547 = vmatpush3.bf16.msra.mxu1 (!%p142_p9), %v592_v0  ;;  %s162_s6 = sand.u32 (!%p142_p9), 1, %s656_s13   ;;  %s514_s11 = sshll.u32 (!%p142_p9), %s710_s16, 11 }
  0x10   : > { %549 = vmatprep.subr.msk.bf16.mxu0 (!%p142_p9), %vm273_vm0, %v593_v1  ;;  %550 = vmatprep.subr.msk.bf16.mxu1 (!%p142_p9), %vm273_vm0, %v593_v1  ;;  %s487_s9 = sshll.u32 (!%p142_p9), %s162_s6, 7  ;;  %s790_s20 = scalar_lea.hbm (!%p142_p9), %s850_s3, %s514_s11 }
  0x11   : > { %s761_s10 = scalar_lea.vmem (!%p142_p9), [#allocation2], %s487_s9  ;;  %s806_s24 = scalar_lea.sflag (!%p142_p9), [#allocation3], %s162_s6 }
  0x12   : > { %s421_s17 = sshll.u32 (!%p142_p9), %s761_s10, 4  ;;  %s666_s26 = smov (!%p142_p9), [#allocation2]   ;;  %s792_s17 = int_to_ptr.vmem [resolvable:$true] %s421_s17 }
  0x13   : > { %528 = vmatpush3.bf16.msra.mxu0 (!%p142_p9), %v275_v2  ;;  %548 = vmatpush3.bf16.msra.mxu1 (!%p142_p9), %v275_v2  ;;  %s602_s25 = scalar_lea.vmem (!%p142_p9), %s792_s17, 2048  ;;  %s606_s27 = sshll.u32 (!%p142_p9), %s666_s26, 4  ;;  %s607_s27 = int_to_ptr.vmem [resolvable:$false] %s606_s27 }
  0x14   : > { %p603_p11 = scmp.ne.s32.totalorder (!%p142_p9), %s792_s17, %s602_s25  ;;  %p609_p0 = scmp.lt.s32.totalorder (!%p142_p9), %s792_s17, %s607_s27 }
  0x15   : > { %s858_s28 = smov (!%p166_p10, %s488_s28), 63 }
  0x16   : > { %s489_s29 = sshll.u32 %s858_s28, 2  ;;  %p604_p12 = pnand %p603_p11, %p727_p5 }
  0x17   : > { %s169_s5 = scalar_lea.vmem %s847_s0, %s489_s29  ;;  %s608_s28 = scalar_lea.vmem %s607_s27, 4096 }
  0x18   : > { %v594_v3 = vld [vmem:[%s169_s5] sm:$0xff]   ;;  %v596_v5 = vld [vmem:[%s169_s5 + $0x8] sm:$0xff]   ;;  %v598_v7 = vld [vmem:[%s169_s5 + $0x10] sm:$0xff]   ;;  %p605_p13 = pneg %p604_p12  ;;  %p610_p1 = scmp.lt.s32.totalorder %s608_s28, %s602_s25 }
  0x19   : > { %v595_v4 = vld [vmem:[%s169_s5 + $0x20] sm:$0xff]   ;;  %529 = vmatprep.mubr.msk.bf16.mxu0 %vm248_vm1, %v594_v3  ;;  %v597_v6 = vld [vmem:[%s169_s5 + $0x28] sm:$0xff]   ;;  %v599_v8 = vld [vmem:[%s169_s5 + $0x30] sm:$0xff]  }
  0x1a   : > { %537 = vmatprep.mubr.msk.bf16.mxu1 %vm248_vm1, %v595_v4  ;;  %530 = vmatmul.mubr.msk.bf16.vlgmr.msra.gmra.mrb[0].mxu0 %vm248_vm1, %v596_v5  ;;  %v600_v9 = vld [vmem:[%s169_s5 + $0x18] sm:$0xff]   ;;  %p611_p2 = por %p610_p1, %p609_p0 }
  0x1b   : > { %538 = vmatmul.mubr.msk.bf16.vlgmr.msra.gmra.mrb[0].mxu1 %vm248_vm1, %v597_v6  ;;  %533 = vmatprep.mubr.msk.bf16.mxu0 %vm248_vm1, %v598_v7  ;;  %v601_v10 = vld [vmem:[%s169_s5 + $0x38] sm:$0xff]  }
  0x1c   : > { %541 = vmatprep.mubr.msk.bf16.mxu1 %vm248_vm1, %v599_v8  ;;  %p612_p3 = pnand %p611_p2, %p605_p13 }
  0x22   : > { %534 = vmatmul.mubr.msk.bf16.gmra.mrb[4].mxu0 %vm248_vm1, %v600_v9 }
  0x23   : > { %542 = vmatmul.mubr.msk.bf16.gmra.mrb[4].mxu1 %vm248_vm1, %v601_v10 }
  0xed   : > { %v531_v12 = vpop.f32.mrb[0].mxu0 }
  0xee   : > { %v320_v13 = vadd.f32 %v531_v12, %v490_v11  ;;  %v539_v14 = vpop.f32.mrb[0].mxu1  ;;  %v311_v15 = vpop.f32.mrb[1].mxu0 }
  0xef   : > { %v352_v16 = vadd.f32 %v539_v14, %v490_v11  ;;  %v312_v17 = vadd.f32 %v490_v11, %v311_v15  ;;  %v343_v18 = vpop.f32.mrb[1].mxu1  ;;  %v532_v19 = vpop.f32.mrb[2].mxu0 }
  0xf0   : > { %v376_v20 = vmax.f32 %v320_v13, 0.0  ;;  %v344_v21 = vadd.f32 %v490_v11, %v343_v18  ;;  %v323_v22 = vadd.f32 %v532_v19, %v490_v11  ;;  %v540_v23 = vpop.f32.mrb[2].mxu1  ;;  %v314_v24 = vpop.f32.mrb[3].mxu0 }
  0xf1   : > { %v384_v25 = vmax.f32 %v352_v16, 0.0  ;;  %v374_v26 = vmax.f32 %v312_v17, 0.0  ;;  %v355_v27 = vadd.f32 %v540_v23, %v490_v11  ;;  %v315_v28 = vadd.f32 %v490_v11, %v314_v24  ;;  %v346_v29 = vpop.f32.mrb[3].mxu1 }
  0xf2   : > { %393 = vst.msk [vmem:[%s761_s10 + $0x10] sm:$0xff] %vm390_vm2, %v376_v20  ;;  %v382_v30 = vmax.f32 %v344_v21, 0.0  ;;  %v377_v31 = vmax.f32 %v323_v22, 0.0  ;;  %v347_v32 = vadd.f32 %v490_v11, %v346_v29 }
  0xf3   : > { %401 = vst.msk [vmem:[%s761_s10 + $0x50] sm:$0xff] %vm390_vm2, %v384_v25  ;;  %391 = vst.msk [vmem:[%s761_s10] sm:$0xff] %vm390_vm2, %v374_v26  ;;  %v385_v33 = vmax.f32 %v355_v27, 0.0  ;;  %v375_v34 = vmax.f32 %v315_v28, 0.0 }
  0xf4   : > { %399 = vst.msk [vmem:[%s761_s10 + $0x40] sm:$0xff] %vm390_vm2, %v382_v30  ;;  %394 = vst.msk [vmem:[%s761_s10 + $0x18] sm:$0xff] %vm390_vm2, %v377_v31  ;;  %v383_v35 = vmax.f32 %v347_v32, 0.0 }
  0xf5   : > { %402 = vst.msk [vmem:[%s761_s10 + $0x58] sm:$0xff] %vm390_vm2, %v385_v33  ;;  %392 = vst.msk [vmem:[%s761_s10 + $0x8] sm:$0xff] %vm390_vm2, %v375_v34  ;;  %v535_v36 = vpop.f32.mrb[4].mxu0 }
  0xf6   : > { %400 = vst.msk [vmem:[%s761_s10 + $0x48] sm:$0xff] %vm390_vm2, %v383_v35  ;;  %v336_v37 = vadd.f32 %v535_v36, %v490_v11  ;;  %v543_v38 = vpop.f32.mrb[4].mxu1  ;;  %v327_v39 = vpop.f32.mrb[5].mxu0 }
  0xf7   : > { %v368_v40 = vadd.f32 %v543_v38, %v490_v11  ;;  %v328_v41 = vadd.f32 %v490_v11, %v327_v39  ;;  %v359_v42 = vpop.f32.mrb[5].mxu1  ;;  %v536_v43 = vpop.f32.mrb[6].mxu0 }
  0xf8   : > { %v380_v44 = vmax.f32 %v336_v37, 0.0  ;;  %v360_v45 = vadd.f32 %v490_v11, %v359_v42  ;;  %v339_v46 = vadd.f32 %v536_v43, %v490_v11  ;;  %v544_v47 = vpop.f32.mrb[6].mxu1  ;;  %v330_v48 = vpop.f32.mrb[7].mxu0 }
  0xf9   : > { %v388_v49 = vmax.f32 %v368_v40, 0.0  ;;  %v378_v50 = vmax.f32 %v328_v41, 0.0  ;;  %v371_v51 = vadd.f32 %v544_v47, %v490_v11  ;;  %v331_v52 = vadd.f32 %v490_v11, %v330_v48  ;;  %v362_v53 = vpop.f32.mrb[7].mxu1 }
  0xfa   : > { %397 = vst.msk [vmem:[%s761_s10 + $0x30] sm:$0xff] %vm390_vm2, %v380_v44  ;;  %v386_v54 = vmax.f32 %v360_v45, 0.0  ;;  %v381_v55 = vmax.f32 %v339_v46, 0.0  ;;  %v363_v56 = vadd.f32 %v490_v11, %v362_v53 }
  0xfb   : > { %405 = vst.msk [vmem:[%s761_s10 + $0x70] sm:$0xff] %vm390_vm2, %v388_v49  ;;  %395 = vst.msk [vmem:[%s761_s10 + $0x20] sm:$0xff] %vm390_vm2, %v378_v50  ;;  %v389_v57 = vmax.f32 %v371_v51, 0.0  ;;  %v379_v58 = vmax.f32 %v331_v52, 0.0 }
  0xfc   : > { %403 = vst.msk [vmem:[%s761_s10 + $0x60] sm:$0xff] %vm390_vm2, %v386_v54  ;;  %398 = vst.msk [vmem:[%s761_s10 + $0x38] sm:$0xff] %vm390_vm2, %v381_v55  ;;  %v387_v59 = vmax.f32 %v363_v56, 0.0 }
  0xfd   : > { %406 = vst.msk [vmem:[%s761_s10 + $0x78] sm:$0xff] %vm390_vm2, %v389_v57  ;;  %396 = vst.msk [vmem:[%s761_s10 + $0x28] sm:$0xff] %vm390_vm2, %v379_v58 }
  0xfe   : > { %404 = vst.msk [vmem:[%s761_s10 + $0x68] sm:$0xff] %vm390_vm2, %v387_v59 }
  0xff   : > { %615 = shalt.err (!%p612_p3)
}
 0x100   : > { %s616_s29 = scalar_lea.hbm %s790_s20, 2048  ;;  %s620_s5 = scalar_lea.hbm %s850_s3, 8192 }
 0x101   : > { %p617_p4 = scmp.ne.s32.totalorder %s790_s20, %s616_s29  ;;  %p621_p9 = scmp.lt.u32.totalorder %s790_s20, %s850_s3 }
 0x102   : > { %p622_p10 = scmp.lt.u32.totalorder %s620_s5, %s616_s29  ;;  %p624_p12 = scmp.lt.u32.totalorder %s616_s29, %s790_s20 }
 0x103   : > { %p618_p7 = pnand %p617_p4, %p727_p5 }
 0x104   : > { %p623_p11 = por %p622_p10, %p621_p9 }
 0x105   : > { %p619_p8 = pneg %p618_p7 }
 0x106   : > { %p625_p13 = por %p624_p12, %p623_p11 }
 0x108   : > { %p626_p0 = pnand %p625_p13, %p619_p8 }
 0x10a   : > { %629 = shalt.err (!%p626_p0)
}
 0x10b   : > { %s667_s8 = smov 128   ;;  %s668_s9 = smov 8  }
 0x10c   : > { %551 = dma.vmem_to_hbm [thread:$0]  (%p727_p5), %s792_s17, 2048, %s790_s20, %s806_s24, %s667_s8, %s667_s8, %s668_s9  }
 0x10d PF: > { %p557_p1 = scmp.ge.s32.totalorder %s664_s15, 2  ;;  %s436_s10 = sand.u32 1, %s652_s12  }
 0x10e   : > { %s437_s11 = scalar_lea.sflag [#allocation3], %s436_s10 }
 0x10f   : > { %p554_p2 = pnand %p557_p1, %p731_p6 }
 0x111   : > { %647 = dma.done.wait (!%p554_p2), %s437_s11, 2048  }
 0x112   : > { %649 = vsyncadd (!%p554_p2), %s437_s11, 4294965248  ;;  %p13_p3 = scmp.ge.s32.totalorder %s714_s18, 6   ;;  %s853_s12 = smov %s656_s13 }
 0x113   : > { %s854_s13 = smov %s660_s14  ;;  %s855_s14 = smov %s725_s21 }
 0x114   : > { %s856_s15 = smov %s714_s18  ;;  %15 = sbr.rel (!%p13_p3) target bundleno = 3 (0x3), region = 67 }
 0x11b   :  { %442 = vsyncpa [#allocation3], 1 }
 0x11c   :  { %444 = vsyncpa [#allocation3 + $0x1], 1 }

</bundles_post_ra>
